<compile_context>
chip_gen: v7x
topology: tpu7x:2x2x1
jax: 0.10.0
libtpu: 0.0.40
codegen_flags: <defaults>
</compile_context>

<pallas_src>
import jax
import jax.numpy as jnp
from jax.experimental import pallas as pl
from jax.experimental.pallas import tpu as pltpu


def _linear_block_kernel(w_ref, shift_ref, x_ref, o_ref):
    # w_ref:     (C_out, C_in)  conv weight with BN scale folded in
    # shift_ref: (C_out, 1)     BN shift = beta - running_mean * scale
    # x_ref:     (C_in,  T)     lane-dense input slab for one batch element
    # o_ref:     (C_out, T)     output slab
    acc = jnp.dot(w_ref[...], x_ref[...], preferred_element_type=jnp.float32)
    o_ref[...] = (acc + shift_ref[...]).astype(o_ref.dtype)


def linear_block(x, weight, gamma, beta, running_mean, running_var,
                 eps=1e-5, tile_hw=2048):
    """LinearBlock forward: Conv2d(1x1, bias=False) followed by BatchNorm2d (eval).

    x:       (N, C_in, H, W)      NCHW activations
    weight:  (C_out, C_in, 1, 1)  conv weight
    gamma, beta, running_mean, running_var: (C_out,) BatchNorm parameters
    """
    N, C_in, H, W = x.shape
    C_out = weight.shape[0]
    if weight.shape[1:] != (C_in, 1, 1):
        raise NotImplementedError(
            "only LinearBlock defaults (1x1 kernel, stride 1, no padding, groups=1) "
            "are supported")
    # TODO(synk): non-default kernel/stride/padding/groups are not implemented.

    HW = H * W
    if N == 0 or HW == 0:
        return jnp.zeros((N, C_out, H, W), x.dtype)

    # Fold BatchNorm (inference / running statistics) into the conv:
    #   y = scale * (W @ x) + shift,  scale = gamma / sqrt(var + eps)
    # TODO(synk): training-mode BN (batch statistics) is not fused here.
    scale = gamma.astype(jnp.float32) / jnp.sqrt(
        running_var.astype(jnp.float32) + eps)
    shift = (beta.astype(jnp.float32)
             - running_mean.astype(jnp.float32) * scale).reshape(C_out, 1)
    w2d = weight.reshape(C_out, C_in).astype(jnp.float32)
    w_folded = (w2d * scale[:, None]).astype(x.dtype)

    # Lane-dense layout without any HBM transpose: NCHW -> (N, C_in, H*W).
    x3d = x.reshape(N, C_in, HW)

    # Wide lane-dense spatial tile: multiple of 128 when tiling, full extent
    # when HW is small. Bounds the double-buffered VMEM working set.
    thw = HW if HW <= tile_hw else tile_hw  # tile_hw must be a multiple of 128

    grid = (N, pl.cdiv(HW, thw))

    out3d = pl.pallas_call(
        _linear_block_kernel,
        out_shape=jax.ShapeDtypeStruct((N, C_out, HW), x.dtype),
        grid=grid,
        in_specs=[
            pl.BlockSpec((C_out, C_in), lambda n, j: (0, 0)),         # folded W
            pl.BlockSpec((C_out, 1), lambda n, j: (0, 0)),            # BN shift
            pl.BlockSpec((None, C_in, thw), lambda n, j: (n, 0, j)),  # x slab
        ],
        out_specs=pl.BlockSpec((None, C_out, thw), lambda n, j: (n, 0, j)),
        compiler_params=pltpu.CompilerParams(
            dimension_semantics=("parallel", "parallel"),
        ),
    )(w_folded, shift, x3d)

    return out3d.reshape(N, C_out, H, W)


def _linear_block_reference(x, weight, gamma, beta, running_mean, running_var,
                            eps=1e-5):
    """Pure-JAX reference: Conv2d(1x1, bias=False) then BatchNorm2d (eval)."""
    C_out, C_in = weight.shape[0], weight.shape[1]
    w2d = weight.reshape(C_out, C_in).astype(jnp.float32)
    y = jnp.einsum("nchw,oc->nohw", x.astype(jnp.float32), w2d,
                   precision=jax.lax.Precision.HIGHEST)
    inv = (gamma / jnp.sqrt(running_var + eps))[None, :, None, None]
    out = (y - running_mean[None, :, None, None]) * inv + beta[None, :, None, None]
    return out.astype(x.dtype)


if __name__ == "__main__":
    key = jax.random.PRNGKey(0)
    kx, kw, kg, kb, km, kv = jax.random.split(key, 6)

    # Small shapes consistent with the module: batch=2, in_c=16 -> out_c=32, 16x16.
    N, C_in, H, W = 2, 16, 16, 16
    C_out = 32

    x = jax.random.normal(kx, (N, C_in, H, W), dtype=jnp.float32)
    weight = 0.1 * jax.random.normal(kw, (C_out, C_in, 1, 1), dtype=jnp.float32)
    gamma = jax.random.uniform(kg, (C_out,), minval=0.5, maxval=1.5,
                               dtype=jnp.float32)
    beta = 0.1 * jax.random.normal(kb, (C_out,), dtype=jnp.float32)
    running_mean = 0.1 * jax.random.normal(km, (C_out,), dtype=jnp.float32)
    running_var = jax.random.uniform(kv, (C_out,), minval=0.5, maxval=1.5,
                                     dtype=jnp.float32)

    y = linear_block(x, weight, gamma, beta, running_mean, running_var)
    jax.block_until_ready(y)

    y_ref = _linear_block_reference(x, weight, gamma, beta, running_mean,
                                    running_var)

    assert y.shape == (N, C_out, H, W), f"shape mismatch: {y.shape}"
    assert y.dtype == x.dtype, f"dtype mismatch: {y.dtype}"
    max_err = float(jnp.max(jnp.abs(y.astype(jnp.float32)
                                    - y_ref.astype(jnp.float32))))
    assert max_err < 1e-2, f"numerical mismatch: max abs err {max_err}"

    print("KERNEL_OK")
</pallas_src>

<mosaic_0001>
module attributes {stable_mosaic.version = 11 : i64} {
  func.func @_linear_block_kernel(%arg0: i32, %arg1: i32, %arg2: memref<32x16xf32, #tpu.memory_space<vmem>>, %arg3: memref<32x1xf32, #tpu.memory_space<vmem>>, %arg4: memref<1x16x256xf32, #tpu.memory_space<vmem>>, %arg5: memref<1x32x256xf32, #tpu.memory_space<vmem>>) attributes {dimension_semantics = [#tpu.dimension_semantics<parallel>, #tpu.dimension_semantics<parallel>], iteration_bounds = array<i64: 2, 1>, scalar_prefetch = 0 : i64, scratch_operands = 0 : i64, tpu.core_type = #tpu.core_type<tc>, window_params = [{pipeline_mode = #tpu.pipeline_mode<synchronous>, transform_indices = @transform_0, window_bounds = array<i64: 32, 16>}, {pipeline_mode = #tpu.pipeline_mode<synchronous>, transform_indices = @transform_1, window_bounds = array<i64: 32, 1>}, {transform_indices = @transform_2, window_bounds = array<i64: 1, 16, 256>}, {transform_indices = @transform_3, window_bounds = array<i64: 1, 32, 256>}]} {
    %c0 = arith.constant 0 : index
    %c0_0 = arith.constant 0 : index
    %0 = vector.load %arg2[%c0, %c0_0] : memref<32x16xf32, #tpu.memory_space<vmem>>, vector<32x16xf32>
    %c0_1 = arith.constant 0 : index
    %c0_2 = arith.constant 0 : index
    %c0_3 = arith.constant 0 : index
    %1 = vector.load %arg4[%c0_1, %c0_2, %c0_3] : memref<1x16x256xf32, #tpu.memory_space<vmem>>, vector<1x16x256xf32>
    %2 = vector.shape_cast %1 : vector<1x16x256xf32> to vector<16x256xf32>
    %cst = arith.constant dense<0.000000e+00> : vector<32x256xf32>
    %3 = tpu.matmul %0, %2, %cst {dimension_numbers = #tpu.dot_dimension_numbers<[1], [0], [0], [1], [0, 0, 1, 1], [], []>} : vector<32x16xf32>, vector<16x256xf32>, vector<32x256xf32> -> vector<32x256xf32>
    %c0_4 = arith.constant 0 : index
    %c0_5 = arith.constant 0 : index
    %4 = vector.load %arg3[%c0_4, %c0_5] : memref<32x1xf32, #tpu.memory_space<vmem>>, vector<32x1xf32>
    %5 = vector.broadcast %4 : vector<32x1xf32> to vector<32x256xf32>
    %6 = arith.addf %3, %5 : vector<32x256xf32>
    %c0_6 = arith.constant 0 : index
    %c0_7 = arith.constant 0 : index
    %c0_8 = arith.constant 0 : index
    %7 = vector.load %arg5[%c0_6, %c0_7, %c0_8] : memref<1x32x256xf32, #tpu.memory_space<vmem>>, vector<1x32x256xf32>
    %8 = vector.shape_cast %7 : vector<1x32x256xf32> to vector<32x256xf32>
    %9 = vector.shape_cast %6 : vector<32x256xf32> to vector<1x32x256xf32>
    tpu.vector_store %arg5[%c0_6, %c0_7, %c0_8], %9 {strides = array<i32>} : memref<1x32x256xf32, #tpu.memory_space<vmem>>, vector<1x32x256xf32>,
    return
  }
  func.func @transform_0(%arg0: i32, %arg1: i32) -> (i32, i32) {
    %c0_i32 = arith.constant 0 : i32
    %c0_i32_0 = arith.constant 0 : i32
    %c0_i32_1 = arith.constant 0 : i32
    return %c0_i32, %c0_i32_0 : i32, i32
  }
  func.func @transform_1(%arg0: i32, %arg1: i32) -> (i32, i32) {
    %c0_i32 = arith.constant 0 : i32
    %c0_i32_0 = arith.constant 0 : i32
    %c0_i32_1 = arith.constant 0 : i32
    return %c0_i32, %c0_i32_0 : i32, i32
  }
  func.func @transform_2(%arg0: i32, %arg1: i32) -> (i32, i32, i32) {
    %c0_i32 = arith.constant 0 : i32
    %c0_i32_0 = arith.constant 0 : i32
    return %arg0, %c0_i32, %arg1 : i32, i32, i32
  }
  func.func @transform_3(%arg0: i32, %arg1: i32) -> (i32, i32, i32) {
    %c0_i32 = arith.constant 0 : i32
    %c0_i32_0 = arith.constant 0 : i32
    return %arg0, %c0_i32, %arg1 : i32, i32, i32
  }
}

</mosaic_0001>

<bundles_post_ra>
// kernel: tpu_custom_call.1
= control target key start
LH: loop header
LB: loop body
LE: loop exit
PB: predicated region body
PF: predicated region fallthrough
CT: control target
= control target key end

     0   :  { %8 = vsyncpa [#allocation3], 0  ;;  %s771_s0 = inlined_call_operand.vmem [shape: f32[32,16], index: 0, kind: input, shape index: {}]   ;;  %s772_s1 = inlined_call_operand.vmem [shape: f32[32,1], index: 1, kind: input, shape index: {}]   ;;  %s773_s2 = inlined_call_operand.vmem [shape: f32[2,16,256], index: 2, kind: input, shape index: {}]   ;;  %s774_s3 = inlined_call_operand.hbm [shape: f32[2,32,256], index: 3, kind: output, shape index: {}]  }
   0x1   :  { %10 = vsyncpa [#allocation3 + $0x1], 0  ;;  %s628_s12 = smov 0   ;;  %s630_s13 = smov 0  }
   0x2   :  { %s632_s14 = smov 0   ;;  %s634_s15 = smov 0  }
   0x3   :  { %s636_s16 = smov 0   ;;  %s638_s17 = smov 0  }
   0x4 LB: > { %s437_s18 = sadd.s32 4294967295, %s601_s17   ;;  %s438_s19 = sadd.s32 4294967294, %s601_s17   ;;  %s601_s17 = sphi %s638_s17, %s16_s17   ;;  %s597_s16 = sphi %s636_s16, %s781_s16   ;;  %s593_s15 = sphi %s634_s15, %s780_s15   ;;  %s589_s14 = sphi %s632_s14, %s779_s14   ;;  %s585_s13 = sphi %s630_s13, %s778_s13   ;;  %s581_s12 = sphi %s628_s12, %s777_s12  }
   0x5   : > { %s28_s20 = sadd.s32 1, %s597_s16  ;;  %s107_s21 = sadd.s32 1, %s589_s14 }
   0x6   : > { %p30_p0 = scmp.ge.s32.totalorder %s28_s20, 2  ;;  %p117_p1 = scmp.ne.s32.totalorder %s589_s14, %s585_s13 }
   0x7   : > { %p118_p2 = scmp.eq.s32.totalorder %s437_s18, 1  ;;  %p123_p3 = scmp.ne.s32.totalorder %s585_s13, %s581_s12 }
   0x8   : > { %s783_s20 = smov (%p30_p0, %s28_s20), 0  ;;  %p124_p5 = scmp.eq.s32.totalorder %s438_s19, 1 }
   0x9   : > { %p668_p4 = por %p118_p2, %p117_p1  ;;  %s102_s23 = ssub.s32 %s597_s16, %s783_s20 }
   0xa   : > { %p441_p6 = scmp.ge.s32.totalorder %s601_s17, 1  ;;  %p105_p7 = scmp.eq.s32.totalorder %s102_s23, 0 }
   0xb   : > { %p675_p8 = por %p124_p5, %p123_p3  ;;  %p161_p9 = scmp.lt.s32.totalorder %s601_s17, 3 }
   0xc   : > { %s681_s25 = scalar_select %p105_p7, %s589_s14, %s107_s21  }
   0xd   : > { %p162_p10 = pnand %p441_p6, %p161_p9 }
   0xe   : > { %p190_p11 = scmp.lt.s32.totalorder (!%p162_p10), %s593_s15, 1  ;;  %v603_v0 = vmov (!%p162_p10), 0.0   ;;  %v210_v1 = vld [vmem:[%s772_s1 + $0x10] sm:$0xff] (!%p162_p10)  ;;  %v208_v2 = vld [vmem:[%s772_s1] sm:$0xff] (!%p162_p10)  ;;  %v604_v3 = vmov (!%p162_p10), 0   ;;  %v211_v4 = vld [vmem:[%s772_s1 + $0x18] sm:$0xff] (!%p162_p10) }
   0xf   : > { %165 = sbr.rel (%p162_p10) target bundleno = 267 (0x10b), region = 32  ;;  %309 = vmatprep.mubr.f32.mxu0 (!%p162_p10), %v603_v0  ;;  %321 = vmatprep.mubr.f32.mxu1 (!%p162_p10), %v603_v0  ;;  %v209_v5 = vld [vmem:[%s772_s1 + $0x8] sm:$0xff] (!%p162_p10)  ;;  %v200_v12 = vld [vmem:[%s771_s0] sm:$0xff] (!%p162_p10)  ;;  %vm232_vm0 = vcmask (!%p162_p10), 130048   ;;  %v202_v13 = vld [vmem:[%s771_s0 + $0x10] sm:$0xff] (!%p162_p10)  ;;  %s455_s5 = sshll.u32 (!%p162_p10), %s593_s15, 10 }
  0x10   : > { %522 = vset.pattern.permute.xlu1 (!%p162_p10), %v604_v3  ;;  %521 = vset.pattern.permute.xlu0 (!%p162_p10), %v604_v3  ;;  %v201_v14 = vld [vmem:[%s771_s0 + $0x8] sm:$0xff] (!%p162_p10)  ;;  %v203_v15 = vld [vmem:[%s771_s0 + $0x18] sm:$0xff] (!%p162_p10)  ;;  %s605_s18 = smov (!%p162_p10), [#allocation2]  }
  0x11   : > { %224 = vperm.xlu1 (!%p162_p10), %522, %v210_v1   ;;  %214 = vperm.xlu0 (!%p162_p10), %521, %v208_v2   ;;  %s527_s19 = sshll.u32 (!%p162_p10), %s605_s18, 4  ;;  %s528_s19 = int_to_ptr.vmem [resolvable:$false] %s527_s19 }
  0x12   : > { %s529_s21 = scalar_lea.vmem (!%p162_p10), %s528_s19, 2048 }
  0x15   : > { %229 = vperm.xlu1 (!%p162_p10), %522, %v211_v4   ;;  %219 = vperm.xlu0 (!%p162_p10), %521, %v209_v5  }
  0x16   : > { %s191_s30 = scalar_select %p190_p11, %s593_s15, 1 }
  0x17   : > { %s719_s15 = scalar_lea.hbm %s774_s3, %s455_s5 }
  0x18   : > { %s454_s4 = sshll.u32 %s191_s30, 5  ;;  %s186_s30 = sand.u32 1, %s585_s13  }
  0x19   : > { %s197_s11 = scalar_lea.vmem %s773_s2, %s454_s4  ;;  %s442_s4 = sshll.u32 %s186_s30, 6 }
  0x1a   : > { %v205_v6 = vld [vmem:[%s197_s11 + $0x8] sm:$0xff]  ;;  %v207_v7 = vld [vmem:[%s197_s11 + $0x18] sm:$0xff]  ;;  %v204_v8 = vld [vmem:[%s197_s11] sm:$0xff]  ;;  %s188_s6 = scalar_lea.vmem [#allocation2], %s442_s4  ;;  %s725_s10 = scalar_lea.sflag [#allocation3], %s186_s30 }
  0x1b   : > { %v456_v9 = vpack.c.bf16 %v207_v7, %v205_v6  ;;  %v206_v10 = vld [vmem:[%s197_s11 + $0x10] sm:$0xff]  ;;  %s358_s7 = sshll.u32 %s188_s6, 4  ;;  %s721_s7 = int_to_ptr.vmem [resolvable:$true] %s358_s7 }
  0x1c   : > { %v458_v11 = vpack.c.bf16 %v206_v10, %v204_v8  ;;  %s523_s11 = scalar_lea.vmem %s721_s7, 1024  ;;  %p530_p1 = scmp.lt.s32.totalorder %s721_s7, %s528_s19 }
  0x1d   : > { %457 = vmatprep.subr.bf16.mxu0 %v456_v9  ;;  %460 = vmatprep.subr.bf16.mxu1 %v456_v9  ;;  %p524_p12 = scmp.ne.s32.totalorder %s721_s7, %s523_s11  ;;  %p531_p2 = scmp.lt.s32.totalorder %s529_s21, %s523_s11 }
  0x1e   : > { %459 = vmatpush1.bf16.msra.mxu0 %v458_v11  ;;  %461 = vmatpush1.bf16.msra.mxu1 %v458_v11 }
  0x1f   : > { %p525_p13 = pnand %p524_p12, %p668_p4  ;;  %p532_p3 = por %p531_p2, %p530_p1 }
  0x21   : > { %445 = vmatmul.mubr.msk.f32.vlgmr.msra.gmra.mrb[0].mxu0 %vm232_vm0, %v200_v12  ;;  %447 = vmatmul.mubr.msk.f32.vlgmr.msra.gmra.mrb[0].mxu1 %vm232_vm0, %v202_v13  ;;  %p526_p0 = pneg %p525_p13 }
  0x22   : > { %315 = vmatprep.mubr.f32.mxu0 %v603_v0  ;;  %327 = vmatprep.mubr.f32.mxu1 %v603_v0 }
  0x23   : > { %p533_p5 = pnand %p532_p3, %p526_p0 }
  0x25   : > { %446 = vmatmul.mubr.msk.f32.gmra.mrb[2].mxu0 %vm232_vm0, %v201_v14  ;;  %448 = vmatmul.mubr.msk.f32.gmra.mrb[2].mxu1 %vm232_vm0, %v203_v15 }
  0x90   : > { %v225_v16 = vpop.permute.xlu1 %224  ;;  %v215_v17 = vpop.permute.xlu0 %214 }
  0x94   : > { %v230_v26 = vpop.permute.xlu1 %229  ;;  %v220_v27 = vpop.permute.xlu0 %219 }
  0xf4   : > { %v311_v18 = vpop.f32.mrb[0].mxu0  ;;  %v323_v19 = vpop.f32.mrb[0].mxu1 }
  0xf5   : > { %v312_v20 = vadd.f32 %v311_v18, %v215_v17  ;;  %v324_v21 = vadd.f32 %v323_v19, %v225_v16  ;;  %v313_v22 = vpop.f32.mrb[1].mxu0  ;;  %v325_v23 = vpop.f32.mrb[1].mxu1 }
  0xf6   : > { %v314_v24 = vadd.f32 %v313_v22, %v215_v17  ;;  %v326_v25 = vadd.f32 %v325_v23, %v225_v16 }
  0xf7   : > { %334 = vst [vmem:[%s188_s6] sm:$0xff] %v312_v20  ;;  %338 = vst [vmem:[%s188_s6 + $0x20] sm:$0xff] %v324_v21 }
  0xf8   : > { %335 = vst [vmem:[%s188_s6 + $0x8] sm:$0xff] %v314_v24  ;;  %339 = vst [vmem:[%s188_s6 + $0x28] sm:$0xff] %v326_v25  ;;  %v317_v28 = vpop.f32.mrb[2].mxu0  ;;  %v329_v29 = vpop.f32.mrb[2].mxu1 }
  0xf9   : > { %v318_v30 = vadd.f32 %v317_v28, %v220_v27  ;;  %v330_v31 = vadd.f32 %v329_v29, %v230_v26  ;;  %v319_v32 = vpop.f32.mrb[3].mxu0  ;;  %v331_v33 = vpop.f32.mrb[3].mxu1 }
  0xfa   : > { %v320_v34 = vadd.f32 %v319_v32, %v220_v27  ;;  %v332_v35 = vadd.f32 %v331_v33, %v230_v26 }
  0xfb   : > { %336 = vst [vmem:[%s188_s6 + $0x10] sm:$0xff] %v318_v30  ;;  %340 = vst [vmem:[%s188_s6 + $0x30] sm:$0xff] %v330_v31 }
  0xfc   : > { %337 = vst [vmem:[%s188_s6 + $0x18] sm:$0xff] %v320_v34  ;;  %341 = vst [vmem:[%s188_s6 + $0x38] sm:$0xff] %v332_v35 }
  0xfd   : > { %536 = shalt.err (!%p533_p5)
}
  0xfe   : > { %s537_s23 = scalar_lea.hbm %s719_s15, 1024  ;;  %s541_s28 = scalar_lea.hbm %s774_s3, 2048 }
  0xff   : > { %p538_p6 = scmp.ne.s32.totalorder %s719_s15, %s537_s23  ;;  %p542_p10 = scmp.lt.u32.totalorder %s719_s15, %s774_s3 }
 0x100   : > { %p543_p11 = scmp.lt.u32.totalorder %s541_s28, %s537_s23  ;;  %p545_p13 = scmp.lt.u32.totalorder %s537_s23, %s719_s15 }
 0x101   : > { %p539_p7 = pnand %p538_p6, %p668_p4 }
 0x102   : > { %p544_p12 = por %p543_p11, %p542_p10 }
 0x103   : > { %p540_p9 = pneg %p539_p7 }
 0x104   : > { %p546_p0 = por %p545_p13, %p544_p12 }
 0x106   : > { %p547_p1 = pnand %p546_p0, %p540_p9 }
 0x108   : > { %550 = shalt.err (!%p547_p1)
}
 0x109   : > { %s606_s4 = smov 256   ;;  %s607_s5 = smov 16  }
 0x10a   : > { %462 = dma.vmem_to_hbm [thread:$0]  (%p668_p4), %s721_s7, 1024, %s719_s15, %s725_s10, %s606_s4, %s606_s4, %s607_s5  }
 0x10b PF: > { %p468_p2 = scmp.ge.s32.totalorder %s601_s17, 2  ;;  %s373_s6 = sand.u32 1, %s581_s12  }
 0x10c   : > { %s374_s8 = scalar_lea.sflag [#allocation3], %s373_s6 }
 0x10d   : > { %p465_p3 = pnand %p468_p2, %p675_p8 }
 0x10f   : > { %576 = dma.done.wait (!%p465_p3), %s374_s8, 1024  }
 0x110   : > { %578 = vsyncadd (!%p465_p3), %s374_s8, 4294966272  ;;  %s16_s17 = sadd.s32 1, %s601_s17   ;;  %s777_s12 = smov %s585_s13 }
 0x111   : > { %p13_p5 = scmp.ge.s32.totalorder %s16_s17, 4   ;;  %s778_s13 = smov %s589_s14 }
 0x112   : > { %s779_s14 = smov %s681_s25  ;;  %s780_s15 = smov %s597_s16 }
 0x113   : > { %s781_s16 = smov %s783_s20  ;;  %15 = sbr.rel (!%p13_p5) target bundleno = 4 (0x4), region = 67 }
 0x11a   :  { %379 = vsyncpa [#allocation3], 1 }
 0x11b   :  { %381 = vsyncpa [#allocation3 + $0x1], 1 }

</bundles_post_ra>
